<compile_context>
chip_gen: v6e
topology: v6e:2x2x1
jax: 0.10.0
libtpu: 0.0.40
codegen_flags: <defaults>
</compile_context>

<pallas_src>
import functools

import jax
import jax.numpy as jnp
from jax.experimental import pallas as pl
from jax.experimental.pallas import tpu as pltpu


def _round_up(x: int, m: int) -> int:
    return ((x + m - 1) // m) * m


def _pick_tile(dim: int, max_tile: int, multiple: int) -> int:
    """Tile size (multiple of `multiple`, <= max_tile) minimizing padding of `dim`.

    Prefers the largest tile among the minimal-padding candidates.
    """
    if dim <= max_tile:
        return min(max_tile, _round_up(dim, multiple))
    best_t = multiple
    best_pad = _round_up(dim, multiple)
    t = multiple
    while t <= max_tile:
        pad = _round_up(dim, t)
        if pad <= best_pad:  # '<=' prefers the larger tile on ties
            best_pad, best_t = pad, t
        t += multiple
    return best_t


# --------------------------------------------------------------------------
# Kernel bodies
# --------------------------------------------------------------------------
def _linear_relu_kernel_k1(x_ref, w_ref, b_ref, o_ref):
    # grid_K == 1: single MXU pass, fully fused bias + ReLU, no accumulator.
    p = jnp.dot(x_ref[...], w_ref[...], preferred_element_type=jnp.float32)
    o_ref[...] = jnp.maximum(p + b_ref[...], 0.0)


def _linear_relu_kernel_multik(x_ref, w_ref, b_ref, o_ref):
    # grid_K >= 2: accumulate directly into the f32 output block (resident in
    # VMEM across the k axis). First step stores, middle steps add, last step
    # fuses dot + bias + ReLU in place — no scratch, no extra round trip.
    k = pl.program_id(2)
    last = pl.num_programs(2) - 1
    p = jnp.dot(x_ref[...], w_ref[...], preferred_element_type=jnp.float32)

    @pl.when(k == 0)
    def _first():
        o_ref[...] = p

    @pl.when(jnp.logical_and(k > 0, k < last))
    def _middle():
        o_ref[...] += p

    @pl.when(k == last)
    def _last():
        o_ref[...] = jnp.maximum(o_ref[...] + p + b_ref[...], 0.0)


# --------------------------------------------------------------------------
# Jitted forward
# --------------------------------------------------------------------------
@functools.partial(
    jax.jit,
    static_argnames=(
        "in_features", "out_features", "tn", "tk", "tm_max", "use_bf16",
    ),
)
def _linear_relu_forward(x, w_t, b, *, in_features, out_features, tn, tk,
                         tm_max, use_bf16):
    B, In = x.shape
    assert In == in_features, "x feature dim must match layer in_features"
    K_pad, N_pad = w_t.shape

    # --- batch-dependent M tile (padding-aware) -----------------------------
    sub = 16 if use_bf16 else 8
    tm = _pick_tile(B, tm_max, sub)
    M_pad = _round_up(B, tm)

    grid_m = M_pad // tm
    grid_n = N_pad // tn
    grid_k = K_pad // tk

    # v7x has 2 TensorCores: if there is only one output block but M is
    # splittable, halve tm so both cores get work (parallel grid axes).
    if grid_m * grid_n == 1 and tm >= 2 * sub:
        tm = _round_up(tm // 2, sub)
        M_pad = _round_up(B, tm)
        grid_m = M_pad // tm

    x_dtype = jnp.bfloat16 if use_bf16 else jnp.float32
    x_p = jnp.pad(x.astype(x_dtype), ((0, M_pad - B), (0, K_pad - In)))

    grid = (grid_m, grid_n, grid_k)
    kernel = _linear_relu_kernel_k1 if grid_k == 1 else _linear_relu_kernel_multik

    # VMEM budget: double-buffered x / W / out blocks (+ bias); cap at 48 MiB
    # so the same config never exceeds v7x's 64 MiB physical VMEM.
    in_bytes = jnp.dtype(x_dtype).itemsize
    vmem_est = 2 * (tm * tk + tk * tn) * in_bytes + 2 * (tm * tn + tn) * 4
    vmem_limit = int(min(48 * 1024 * 1024,
                         max(32 * 1024 * 1024, vmem_est * 5 // 4)))

    cost = pl.CostEstimate(
        flops=2 * M_pad * K_pad * N_pad,
        transcendentals=0,
        bytes_accessed=in_bytes * (M_pad * K_pad + K_pad * N_pad)
        + 4 * M_pad * N_pad,
    )

    out_padded = pl.pallas_call(
        kernel,
        out_shape=jax.ShapeDtypeStruct((M_pad, N_pad), jnp.float32),
        grid_spec=pltpu.PrefetchScalarGridSpec(
            num_scalar_prefetch=0,
            grid=grid,
            in_specs=[
                pl.BlockSpec((tm, tk), lambda i, j, k: (i, k)),   # x tile
                pl.BlockSpec((tk, tn), lambda i, j, k: (k, j)),   # W^T tile
                pl.BlockSpec((1, tn), lambda i, j, k: (0, j)),    # bias tile
            ],
            out_specs=pl.BlockSpec((tm, tn), lambda i, j, k: (i, j)),
        ),
        compiler_params=pltpu.CompilerParams(
            dimension_semantics=("parallel", "parallel", "arbitrary"),
            vmem_limit_bytes=vmem_limit,
        ),
        cost_estimate=cost,
    )(x_p, w_t, b)

    return out_padded[:B, :out_features]


# --------------------------------------------------------------------------
# Module-like wrapper: prepares params once at construction
# --------------------------------------------------------------------------
class BasicFullyConnected:
    """Pallas-TPU equivalent of nn.Sequential(nn.Linear(in, out), nn.ReLU()).

    weight: (Out, In) PyTorch convention; transposed + padded ONCE here.
    """

    def __init__(self, weight, bias, *, tm_max=256, tn_max=1024, tk_max=2048,
                 use_bf16=False, small_xla_fallback=False):
        Out, In = weight.shape
        assert bias.shape == (Out,)
        self.in_features = In
        self.out_features = Out
        self.tm_max = tm_max
        self.use_bf16 = use_bf16

        # N / K tiles depend only on layer shape: fixed at init.
        self.tn = _pick_tile(Out, tn_max, 128)
        self.tk = _pick_tile(In, tk_max, 128)
        n_pad = _round_up(Out, self.tn)
        k_pad = _round_up(In, self.tk)

        w_dtype = jnp.bfloat16 if use_bf16 else jnp.float32
        # One-time transpose + pad -> (K_pad, N_pad), lives in HBM thereafter.
        self.w_t = jnp.pad(
            jnp.asarray(weight, jnp.float32).T,
            ((0, k_pad - In), (0, n_pad - Out)),
        ).astype(w_dtype)
        self.b = jnp.pad(
            jnp.asarray(bias, jnp.float32).reshape(1, Out),
            ((0, 0), (0, n_pad - Out)),
        )

        # Optional fused-XLA fast path for tiny problems (off by default so
        # the Pallas kernel is always exercised).
        self._w_small = jnp.asarray(weight, jnp.float32).T if small_xla_fallback else None
        self._b_small = jnp.asarray(bias, jnp.float32) if small_xla_fallback else None

    def __call__(self, x):
        if (self._w_small is not None
                and x.shape[0] * self.in_features * self.out_features <= (1 << 14)):
            return jnp.maximum(x @ self._w_small + self._b_small, 0.0)
        return _linear_relu_forward(
            x, self.w_t, self.b,
            in_features=self.in_features,
            out_features=self.out_features,
            tn=self.tn, tk=self.tk,
            tm_max=self.tm_max,
            use_bf16=self.use_bf16,
        )


if __name__ == "__main__":
    key = jax.random.PRNGKey(0)
    k_x, k_w, k_b, k_x2, k_w2, k_b2 = jax.random.split(key, 6)

    # --- demo shape from the module (single-K-step fused kernel) ------------
    batch, input_size, output_size = 8, 32, 16
    x = jax.random.normal(k_x, (batch, input_size), dtype=jnp.float32)
    bound = 1.0 / jnp.sqrt(jnp.float32(input_size))
    weight = jax.random.uniform(
        k_w, (output_size, input_size), dtype=jnp.float32, minval=-bound, maxval=bound
    )
    bias = jax.random.uniform(
        k_b, (output_size,), dtype=jnp.float32, minval=-bound, maxval=bound
    )

    model = BasicFullyConnected(weight, bias)
    out = jax.block_until_ready(model(x))
    ref = jnp.maximum(x @ weight.T + bias, 0.0)
    assert out.shape == (batch, output_size)
    assert jnp.allclose(out, ref, atol=1e-5, rtol=1e-5)

    # --- second config exercising the multi-K accumulation path -------------
    b2, in2, out2 = 16, 256, 64
    x2 = jax.random.normal(k_x2, (b2, in2), dtype=jnp.float32)
    bound2 = 1.0 / jnp.sqrt(jnp.float32(in2))
    w2 = jax.random.uniform(k_w2, (out2, in2), jnp.float32, minval=-bound2, maxval=bound2)
    bi2 = jax.random.uniform(k_b2, (out2,), jnp.float32, minval=-bound2, maxval=bound2)

    model2 = BasicFullyConnected(w2, bi2, tk_max=128)   # forces grid_K = 2
    y2 = jax.block_until_ready(model2(x2))
    ref2 = jnp.maximum(x2 @ w2.T + bi2, 0.0)
    assert y2.shape == (b2, out2)
    assert jnp.allclose(y2, ref2, atol=1e-4, rtol=1e-4)

    print("KERNEL_OK")
</pallas_src>

<mosaic_0001>
module attributes {stable_mosaic.version = 11 : i64} {
  func.func @_linear_relu_kernel_k1(%arg0: i32, %arg1: i32, %arg2: i32, %arg3: memref<8x128xf32, #tpu.memory_space<vmem>>, %arg4: memref<128x128xf32, #tpu.memory_space<vmem>>, %arg5: memref<1x128xf32, #tpu.memory_space<vmem>>, %arg6: memref<8x128xf32, #tpu.memory_space<vmem>>) attributes {dimension_semantics = [#tpu.dimension_semantics<parallel>, #tpu.dimension_semantics<parallel>, #tpu.dimension_semantics<arbitrary>], iteration_bounds = array<i64: 1, 1, 1>, scalar_prefetch = 0 : i64, scratch_operands = 0 : i64, tpu.core_type = #tpu.core_type<tc>, window_params = [{transform_indices = @transform_0, window_bounds = array<i64: 8, 128>}, {transform_indices = @transform_1, window_bounds = array<i64: 128, 128>}, {transform_indices = @transform_2, window_bounds = array<i64: 1, 128>}, {transform_indices = @transform_3, window_bounds = array<i64: 8, 128>}]} {
    %c0 = arith.constant 0 : index
    %c0_0 = arith.constant 0 : index
    %0 = vector.load %arg3[%c0, %c0_0] : memref<8x128xf32, #tpu.memory_space<vmem>>, vector<8x128xf32>
    %c0_1 = arith.constant 0 : index
    %c0_2 = arith.constant 0 : index
    %1 = vector.load %arg4[%c0_1, %c0_2] : memref<128x128xf32, #tpu.memory_space<vmem>>, vector<128x128xf32>
    %cst = arith.constant dense<0.000000e+00> : vector<8x128xf32>
    %2 = tpu.matmul %0, %1, %cst {dimension_numbers = #tpu.dot_dimension_numbers<[1], [0], [0], [1], [0, 0, 1, 1], [], []>} : vector<8x128xf32>, vector<128x128xf32>, vector<8x128xf32> -> vector<8x128xf32>
    %c0_3 = arith.constant 0 : index
    %c0_4 = arith.constant 0 : index
    %3 = vector.load %arg5[%c0_3, %c0_4] : memref<1x128xf32, #tpu.memory_space<vmem>>, vector<1x128xf32>
    %4 = vector.broadcast %3 : vector<1x128xf32> to vector<8x128xf32>
    %5 = arith.addf %2, %4 : vector<8x128xf32>
    %cst_5 = arith.constant 0.000000e+00 : f32
    %6 = vector.broadcast %cst_5 : f32 to vector<8x128xf32>
    %7 = arith.maximumf %5, %6 : vector<8x128xf32>
    %c0_6 = arith.constant 0 : index
    %c0_7 = arith.constant 0 : index
    %8 = vector.load %arg6[%c0_6, %c0_7] : memref<8x128xf32, #tpu.memory_space<vmem>>, vector<8x128xf32>
    tpu.vector_store %arg6[%c0_6, %c0_7], %7 {strides = array<i32>} : memref<8x128xf32, #tpu.memory_space<vmem>>, vector<8x128xf32>,
    return
  }
  func.func @transform_0(%arg0: i32, %arg1: i32, %arg2: i32) -> (i32, i32) {
    %c0_i32 = arith.constant 0 : i32
    return %arg0, %arg2 : i32, i32
  }
  func.func @transform_1(%arg0: i32, %arg1: i32, %arg2: i32) -> (i32, i32) {
    %c0_i32 = arith.constant 0 : i32
    return %arg2, %arg1 : i32, i32
  }
  func.func @transform_2(%arg0: i32, %arg1: i32, %arg2: i32) -> (i32, i32) {
    %c0_i32 = arith.constant 0 : i32
    %c0_i32_0 = arith.constant 0 : i32
    return %c0_i32, %arg1 : i32, i32
  }
  func.func @transform_3(%arg0: i32, %arg1: i32, %arg2: i32) -> (i32, i32) {
    %c0_i32 = arith.constant 0 : i32
    return %arg0, %arg1 : i32, i32
  }
}

</mosaic_0001>

<bundles_post_ra>
// kernel: _linear_relu_forward.1
= control target key start
LH: loop header
LB: loop body
LE: loop exit
PB: predicated region body
PF: predicated region fallthrough
CT: control target
= control target key end

     0   :  { %8 = vsyncpa [#allocation3], 0  ;;  %s281_s0 = inlined_call_operand.vmem [shape: f32[8,128], index: 0, kind: input, shape index: {}]   ;;  %s282_s1 = inlined_call_operand.hbm [shape: f32[128,128], index: 1, kind: input, shape index: {}]   ;;  %s283_s2 = inlined_call_operand.vmem [shape: f32[1,128], index: 2, kind: input, shape index: {}]   ;;  %s284_s3 = inlined_call_operand.hbm [shape: f32[8,128], index: 3, kind: output, shape index: {}]  }
   0x1   :  { %9 = vsyncpa [#allocation4], 0  ;;  %s243_s12 = smov [#allocation2]  }
   0x2   :  { %s17_s13 = sshll.u32 %s243_s12, 4  ;;  %s18_s13 = int_to_ptr.vmem [resolvable:$true] %s17_s13 }
   0x3   :  { %s207_s14 = scalar_lea.vmem %s18_s13, 2048  ;;  %p212_p1 = scmp.lt.s32.totalorder %s18_s13, %s18_s13 }
   0x4   :  { %p208_p0 = scmp.ne.s32.totalorder %s18_s13, %s207_s14  ;;  %p213_p2 = scmp.lt.s32.totalorder %s207_s14, %s207_s14 }
   0x6   :  { %p214_p3 = por %p213_p2, %p212_p1 }
   0x8   :  { %p215_p4 = pnand %p214_p3, %p208_p0 }
   0xa   :  { %218 = shalt.err (!%p215_p4)
}
   0xb   :  { %s244_s15 = smov 128   ;;  %s245_s16 = smov 8  }
   0xc   :  { %23 = dma.hbm_to_vmem [thread:$0]  %s282_s1, 2048, %s18_s13, [#allocation3], %s244_s15, %s244_s15, %s245_s16  }
   0xd   :  { %239 = dma.done.wait [#allocation3], 2048  }
   0xe   :  { %240 = vsyncadd [#allocation3], 4294965248  ;;  %v246_v0 = vmov 0.0   ;;  %vm247_vm0 = vmmov 0   ;;  %v45_v1 = vld [vmem:[#allocation2 + $0x78] sm:$0xff]  ;;  %v44_v2 = vld [vmem:[#allocation2 + $0x70] sm:$0xff] }
   0xf   :  { %158 = vmatprep.subr.mxu0 %v246_v0  ;;  %190 = vmatprep.mubr.msk.f32.mxu0 %vm247_vm0, %v246_v0  ;;  %v43_v3 = vld [vmem:[#allocation2 + $0x68] sm:$0xff]  ;;  %v42_v4 = vld [vmem:[#allocation2 + $0x60] sm:$0xff]  ;;  %v41_v5 = vld [vmem:[#allocation2 + $0x58] sm:$0xff]  ;;  %s248_s22 = smov [#allocation5]  }
  0x10   :  { %159 = vmatpush3.msra.mxu0 %v45_v1  ;;  %v40_v6 = vld [vmem:[#allocation2 + $0x50] sm:$0xff]  ;;  %v39_v7 = vld [vmem:[#allocation2 + $0x48] sm:$0xff]  ;;  %v38_v8 = vld [vmem:[#allocation2 + $0x40] sm:$0xff]  ;;  %s131_s23 = sshll.u32 %s248_s22, 4  ;;  %s132_s23 = int_to_ptr.vmem [resolvable:$true] %s131_s23 }
  0x11   :  { %160 = vmatprep.subr.mxu0 %v246_v0  ;;  %v37_v9 = vld [vmem:[#allocation2 + $0x38] sm:$0xff]  ;;  %v36_v10 = vld [vmem:[#allocation2 + $0x30] sm:$0xff]  ;;  %v35_v11 = vld [vmem:[#allocation2 + $0x28] sm:$0xff]  ;;  %s219_s24 = scalar_lea.vmem %s132_s23, 128  ;;  %p224_p6 = scmp.lt.s32.totalorder %s132_s23, %s132_s23 }
  0x12   :  { %161 = vmatpush3.msra.mxu0 %v44_v2  ;;  %v34_v12 = vld [vmem:[#allocation2 + $0x20] sm:$0xff]  ;;  %v33_v13 = vld [vmem:[#allocation2 + $0x18] sm:$0xff]  ;;  %v32_v14 = vld [vmem:[#allocation2 + $0x10] sm:$0xff]  ;;  %p220_p5 = scmp.ne.s32.totalorder %s132_s23, %s219_s24  ;;  %p225_p7 = scmp.lt.s32.totalorder %s219_s24, %s219_s24 }
  0x13   :  { %162 = vmatprep.subr.mxu0 %v246_v0  ;;  %v31_v15 = vld [vmem:[#allocation2 + $0x8] sm:$0xff]  ;;  %v30_v16 = vld [vmem:[#allocation2] sm:$0xff] }
  0x14   :  { %163 = vmatpush3.msra.mxu0 %v43_v3  ;;  %v29_v17 = vld [vmem:[%s281_s0] sm:$0xff]  ;;  %p226_p8 = por %p225_p7, %p224_p6 }
  0x15   :  { %164 = vmatprep.subr.mxu0 %v246_v0  ;;  %v140_v18 = vld [vmem:[%s283_s2] ss:$0 sm:$0xff] }
  0x16   :  { %165 = vmatpush3.msra.mxu0 %v42_v4  ;;  %p227_p9 = pnand %p226_p8, %p220_p5 }
  0x17   :  { %166 = vmatprep.subr.mxu0 %v246_v0 }
  0x18   :  { %167 = vmatpush3.msra.mxu0 %v41_v5 }
  0x19   :  { %168 = vmatprep.subr.mxu0 %v246_v0 }
  0x1a   :  { %169 = vmatpush3.msra.mxu0 %v40_v6 }
  0x1b   :  { %170 = vmatprep.subr.mxu0 %v246_v0 }
  0x1c   :  { %171 = vmatpush3.msra.mxu0 %v39_v7 }
  0x1d   :  { %172 = vmatprep.subr.mxu0 %v246_v0 }
  0x1e   :  { %173 = vmatpush3.msra.mxu0 %v38_v8 }
  0x1f   :  { %174 = vmatprep.subr.mxu0 %v246_v0 }
  0x20   :  { %175 = vmatpush3.msra.mxu0 %v37_v9 }
  0x21   :  { %176 = vmatprep.subr.mxu0 %v246_v0 }
  0x22   :  { %177 = vmatpush3.msra.mxu0 %v36_v10 }
  0x23   :  { %178 = vmatprep.subr.mxu0 %v246_v0 }
  0x24   :  { %179 = vmatpush3.msra.mxu0 %v35_v11 }
  0x25   :  { %180 = vmatprep.subr.mxu0 %v246_v0 }
  0x26   :  { %181 = vmatpush3.msra.mxu0 %v34_v12 }
  0x27   :  { %182 = vmatprep.subr.mxu0 %v246_v0 }
  0x28   :  { %183 = vmatpush3.msra.mxu0 %v33_v13 }
  0x29   :  { %184 = vmatprep.subr.mxu0 %v246_v0 }
  0x2a   :  { %185 = vmatpush3.msra.mxu0 %v32_v14 }
  0x2b   :  { %186 = vmatprep.subr.mxu0 %v246_v0 }
  0x2c   :  { %187 = vmatpush3.msra.mxu0 %v31_v15 }
  0x2d   :  { %188 = vmatprep.subr.mxu0 %v246_v0 }
  0x2e   :  { %189 = vmatpush3.msra.mxu0 %v30_v16 }
  0x2f   :  { %191 = vmatmul.mubr.f32.vlgmr.msra.gmra.mxu0 %v29_v17 }
  0xef   :  { %v119_v19 = vpop.f32.mrf.mxu0 }
  0xf0   :  { %v120_v20 = vadd.f32 %v140_v18, %v119_v19 }
  0xf1   :  { %v192_v21 = vpop.f32.mrf.mxu0 }
  0xf2   :  { %v123_v22 = vmax.f32 %v120_v20, 0.0 }
  0xf4   :  { %124 = vst [vmem:[#allocation5] sm:$0xff] %v123_v22 }
  0xf5   :  { %230 = shalt.err (!%p227_p9)
}
  0xf6   :  { %134 = dma.vmem_to_hbm [thread:$0]  %s132_s23, 128, %s284_s3, [#allocation4]  }
  0xf7   :  { %241 = dma.done.wait [#allocation4], 128  }
  0xf8   :  { %242 = vsyncadd [#allocation4], 4294967168 }
  0xf9   :  { %138 = vsyncpa [#allocation3], 1 }
  0xfa   :  { %139 = vsyncpa [#allocation4], 1 }

</bundles_post_ra>
